<compile_context>
chip_gen: v6e
topology: v6e:2x2x1
jax: 0.10.0
libtpu: 0.0.40
codegen_flags: <defaults>
</compile_context>

<pallas_src>
import functools

import jax
import jax.numpy as jnp
from jax.experimental import pallas as pl
from jax.experimental.pallas import tpu as pltpu


def _round_up(x: int, m: int) -> int:
    return ((x + m - 1) // m) * m


def _cdiv(a: int, b: int) -> int:
    return (a + b - 1) // b


def _tpu_vmem_info():
    """Returns (physical_vmem_bytes, dual_core_guess). Conservative on failure."""
    vmem = None
    try:
        info = pltpu.get_tpu_info()
        vmem = int(getattr(info, "vmem_capacity_bytes"))
    except Exception:
        vmem = None
    kind = ""
    try:
        kind = jax.devices()[0].device_kind.lower()
    except Exception:
        kind = ""
    dual = "v7" in kind
    if vmem is None:
        if ("v5" in kind) or ("v6" in kind):
            vmem = 128 * 1024 * 1024
        else:
            vmem = 64 * 1024 * 1024  # v7x / unknown: be conservative
    return vmem, dual


def _proj_kernel(x_ref, w_ref, b_ref, o_ref, *, compute_dtype):
    # x_ref: (tile_m, d_model)  (already compute dtype)
    # w_ref: (d_model, tile_n)  native dtype -> cast per tile (avoids full-weight
    #                           HBM copy in the wrapper)
    # b_ref: (1, tile_n) f32;   o_ref: (tile_m, tile_n) out dtype
    acc = jnp.dot(x_ref[...].astype(compute_dtype),
                  w_ref[...].astype(compute_dtype),
                  preferred_element_type=jnp.float32)
    o_ref[...] = (acc + b_ref[...]).astype(o_ref.dtype)


def _proj_kernel_ksplit(x_ref, w_ref, b_ref, o_ref, acc_ref, *, compute_dtype):
    k = pl.program_id(2)

    @pl.when(k == 0)
    def _():
        acc_ref[...] = jnp.zeros_like(acc_ref)

    acc_ref[...] += jnp.dot(x_ref[...].astype(compute_dtype),
                            w_ref[...].astype(compute_dtype),
                            preferred_element_type=jnp.float32)

    @pl.when(k == pl.num_programs(2) - 1)
    def _():
        o_ref[...] = (acc_ref[...] + b_ref[...]).astype(o_ref.dtype)


@functools.partial(jax.jit,
                   static_argnames=("tile_m", "tile_n", "tile_k",
                                    "compute_dtype", "out_dtype"))
def projection_layer(x, weight_t, bias, *, tile_m=None, tile_n=None, tile_k=None,
                     compute_dtype=jnp.bfloat16, out_dtype=None):
    """y = x @ weight_t + bias  (weight_t: (d_model, vocab) == PyTorch W^T)."""
    batch, seq, d_model = x.shape
    vocab = weight_t.shape[1]
    out_dtype = jnp.dtype(out_dtype) if out_dtype is not None else x.dtype
    M = batch * seq

    # Small operand: cast once in the wrapper (it is re-streamed num_n times).
    x2 = x.reshape(M, d_model)
    if x2.dtype != jnp.dtype(compute_dtype):
        x2 = x2.astype(compute_dtype)
    b2 = bias.astype(jnp.float32).reshape(1, vocab)
    w2 = weight_t  # native dtype; NO full-size astype/pad copy here.

    # ---- Generation-aware VMEM budget & default tile sizes -----------------
    phys_vmem, dual_core = _tpu_vmem_info()
    if phys_vmem >= 128 * 1024 * 1024:      # v5e / v6e
        vmem_limit = 100 * 1024 * 1024
        default_tile_n = 2048
    else:                                   # v7x / unknown (64 MiB parts)
        vmem_limit = 48 * 1024 * 1024
        default_tile_n = 1024
    budget = vmem_limit - 4 * 1024 * 1024   # slack for compiler bookkeeping

    x_item = jnp.dtype(x2.dtype).itemsize
    w_item = jnp.dtype(w2.dtype).itemsize
    o_item = jnp.dtype(out_dtype).itemsize

    def footprint(tm, tk, tn):
        buf = 2 * (tm * tk * x_item + tk * tn * w_item
                   + 8 * tn * 4 + tm * tn * o_item)   # double-buffered blocks
        buf += tm * tn * 4                            # f32 dot-result staging
        if tk != d_model:
            buf += tm * tn * 4                        # f32 accumulator scratch
        return buf

    def next_ksplit(tk):
        nk = tk // 2
        if tk % 2 == 0 and nk % 128 == 0 and d_model % nk == 0:
            return nk
        return None

    # ---- Tile selection -----------------------------------------------------
    if tile_m is None:
        tile_m = M if M <= 512 else 512
    if tile_n is None:
        tile_n = vocab if vocab <= default_tile_n else default_tile_n
    if tile_k is None:
        tile_k = d_model
        for _ in range(64):
            if footprint(tile_m, tile_k, tile_n) <= budget:
                break
            nk = next_ksplit(tile_k)
            if tile_n > 1024 and tile_n % 256 == 0:
                tile_n //= 2
            elif nk is not None and nk >= 512:
                tile_k = nk               # K-split: bound VMEM vs d_model
            elif tile_n > 512 and tile_n % 256 == 0:
                tile_n //= 2
            elif tile_m > 256 and tile_m % 32 == 0:
                tile_m //= 2
            elif nk is not None:
                tile_k = nk
            elif tile_n > 128 and tile_n % 256 == 0:
                tile_n //= 2
            elif tile_m > 16 and tile_m % 16 == 0:
                tile_m //= 2
            else:
                break
    # K-split requires an exact, 128-aligned divisor of d_model.
    if tile_k != d_model and (d_model % tile_k != 0 or tile_k % 128 != 0):
        tile_k = d_model

    # v7x: prefer an even num_n so the leading parallel axis splits across both
    # TensorCores without a tail stripe.
    if dual_core and tile_n < vocab and tile_n % 128 == 0:
        nn_ = _cdiv(vocab, tile_n)
        if nn_ > 1 and nn_ % 2 == 1:
            cand = _round_up(_cdiv(vocab, nn_ + 1), 128)
            if 128 <= cand <= tile_n and _cdiv(vocab, cand) % 2 == 0:
                tile_n = cand

    num_m = _cdiv(M, tile_m)
    num_n = _cdiv(vocab, tile_n)
    num_k = d_model // tile_k

    # ---- Cost estimate (includes x re-stream / weight re-fetch factors) ----
    flops = 2 * M * d_model * vocab
    bytes_accessed = (x2.size * x_item * num_n
                      + w2.size * w_item * (num_m if num_k > 1 else 1)
                      + b2.size * 4
                      + M * vocab * o_item)
    cost = pl.CostEstimate(flops=flops, transcendentals=0,
                           bytes_accessed=bytes_accessed)

    out_shape = jax.ShapeDtypeStruct((M, vocab), out_dtype)

    if num_k == 1:
        kernel = functools.partial(_proj_kernel, compute_dtype=compute_dtype)
        grid_spec = pltpu.PrefetchScalarGridSpec(
            num_scalar_prefetch=0,
            # N outer / slow -> each weight stripe is DMA'd from HBM once; only
            # the small x tile re-streams.
            grid=(num_n, num_m),
            in_specs=[
                pl.BlockSpec((tile_m, d_model), lambda n, m: (m, 0)),
                pl.BlockSpec((d_model, tile_n), lambda n, m: (0, n)),
                pl.BlockSpec((1, tile_n), lambda n, m: (0, n)),
            ],
            out_specs=pl.BlockSpec((tile_m, tile_n), lambda n, m: (m, n)),
        )
        semantics = ("parallel", "parallel")
    else:
        kernel = functools.partial(_proj_kernel_ksplit, compute_dtype=compute_dtype)
        grid_spec = pltpu.PrefetchScalarGridSpec(
            num_scalar_prefetch=0,
            grid=(num_n, num_m, num_k),
            in_specs=[
                pl.BlockSpec((tile_m, tile_k), lambda n, m, k: (m, k)),
                pl.BlockSpec((tile_k, tile_n), lambda n, m, k: (k, n)),
                pl.BlockSpec((1, tile_n), lambda n, m, k: (0, n)),
            ],
            out_specs=pl.BlockSpec((tile_m, tile_n), lambda n, m, k: (m, n)),
            scratch_shapes=[pltpu.VMEM((tile_m, tile_n), jnp.float32)],
        )
        semantics = ("parallel", "parallel", "arbitrary")

    out2 = pl.pallas_call(
        kernel,
        out_shape=out_shape,
        grid_spec=grid_spec,
        compiler_params=pltpu.CompilerParams(
            dimension_semantics=semantics,
            vmem_limit_bytes=vmem_limit,
        ),
        cost_estimate=cost,
    )(x2, w2, b2)

    return out2.reshape(batch, seq, vocab)


if __name__ == "__main__":
    # Small shapes consistent with the module's forward: (batch, seq, d_model).
    batch, seq, d_model, vocab_size = 2, 8, 32, 64

    key = jax.random.PRNGKey(0)
    kx, kw, kb = jax.random.split(key, 3)

    x = jax.random.normal(kx, (batch, seq, d_model), dtype=jnp.float32)

    # Deterministic PyTorch-Linear-like uniform init.
    bound = 1.0 / (d_model ** 0.5)
    weight = jax.random.uniform(kw, (vocab_size, d_model), jnp.float32, -bound, bound)
    bias = jax.random.uniform(kb, (vocab_size,), jnp.float32, -bound, bound)
    weight_t = weight.T  # (d_model, vocab_size)

    y_ref = x @ weight_t + bias

    # Exact path (f32 compute) -> tight tolerance.
    y_f32 = jax.block_until_ready(
        projection_layer(x, weight_t, bias, compute_dtype=jnp.float32))
    assert y_f32.shape == (batch, seq, vocab_size)
    assert jnp.allclose(y_f32, y_ref, atol=1e-5, rtol=1e-5)

    # Default fast path (bf16 MXU inputs, in-kernel weight cast, f32 accumulate).
    y_bf16 = jax.block_until_ready(projection_layer(x, weight_t, bias))
    assert y_bf16.shape == (batch, seq, vocab_size)
    assert jnp.allclose(y_bf16, y_ref, atol=2e-2, rtol=2e-2)

    # Optional low-writeback-traffic output dtype.
    y_lo = jax.block_until_ready(
        projection_layer(x, weight_t, bias, out_dtype=jnp.bfloat16))
    assert y_lo.dtype == jnp.bfloat16
    assert jnp.allclose(y_lo.astype(jnp.float32), y_ref, atol=1e-1, rtol=1e-1)

    print("KERNEL_OK")
</pallas_src>

<mosaic_0001>
module attributes {stable_mosaic.version = 11 : i64} {
  func.func @_proj_kernel(%arg0: i32, %arg1: i32, %arg2: memref<16x32xf32, #tpu.memory_space<vmem>>, %arg3: memref<32x64xf32, #tpu.memory_space<vmem>>, %arg4: memref<1x64xf32, #tpu.memory_space<vmem>>, %arg5: memref<16x64xf32, #tpu.memory_space<vmem>>) attributes {dimension_semantics = [#tpu.dimension_semantics<parallel>, #tpu.dimension_semantics<parallel>], iteration_bounds = array<i64: 1, 1>, scalar_prefetch = 0 : i64, scratch_operands = 0 : i64, tpu.core_type = #tpu.core_type<tc>, window_params = [{transform_indices = @transform_0, window_bounds = array<i64: 16, 32>}, {transform_indices = @transform_1, window_bounds = array<i64: 32, 64>}, {transform_indices = @transform_2, window_bounds = array<i64: 1, 64>}, {transform_indices = @transform_3, window_bounds = array<i64: 16, 64>}]} {
    %c0 = arith.constant 0 : index
    %c0_0 = arith.constant 0 : index
    %0 = vector.load %arg2[%c0, %c0_0] : memref<16x32xf32, #tpu.memory_space<vmem>>, vector<16x32xf32>
    %c0_1 = arith.constant 0 : index
    %c0_2 = arith.constant 0 : index
    %1 = vector.load %arg3[%c0_1, %c0_2] : memref<32x64xf32, #tpu.memory_space<vmem>>, vector<32x64xf32>
    %cst = arith.constant dense<0.000000e+00> : vector<16x64xf32>
    %2 = tpu.matmul %0, %1, %cst {dimension_numbers = #tpu.dot_dimension_numbers<[1], [0], [0], [1], [0, 0, 1, 1], [], []>} : vector<16x32xf32>, vector<32x64xf32>, vector<16x64xf32> -> vector<16x64xf32>
    %c0_3 = arith.constant 0 : index
    %c0_4 = arith.constant 0 : index
    %3 = vector.load %arg4[%c0_3, %c0_4] : memref<1x64xf32, #tpu.memory_space<vmem>>, vector<1x64xf32>
    %4 = vector.broadcast %3 : vector<1x64xf32> to vector<16x64xf32>
    %5 = arith.addf %2, %4 : vector<16x64xf32>
    %c0_5 = arith.constant 0 : index
    %c0_6 = arith.constant 0 : index
    %6 = vector.load %arg5[%c0_5, %c0_6] : memref<16x64xf32, #tpu.memory_space<vmem>>, vector<16x64xf32>
    tpu.vector_store %arg5[%c0_5, %c0_6], %5 {strides = array<i32>} : memref<16x64xf32, #tpu.memory_space<vmem>>, vector<16x64xf32>,
    return
  }
  func.func @transform_0(%arg0: i32, %arg1: i32) -> (i32, i32) {
    %c0_i32 = arith.constant 0 : i32
    %c0_i32_0 = arith.constant 0 : i32
    return %arg1, %c0_i32 : i32, i32
  }
  func.func @transform_1(%arg0: i32, %arg1: i32) -> (i32, i32) {
    %c0_i32 = arith.constant 0 : i32
    %c0_i32_0 = arith.constant 0 : i32
    return %c0_i32, %arg0 : i32, i32
  }
  func.func @transform_2(%arg0: i32, %arg1: i32) -> (i32, i32) {
    %c0_i32 = arith.constant 0 : i32
    %c0_i32_0 = arith.constant 0 : i32
    return %c0_i32, %arg0 : i32, i32
  }
  func.func @transform_3(%arg0: i32, %arg1: i32) -> (i32, i32) {
    %c0_i32 = arith.constant 0 : i32
    return %arg1, %arg0 : i32, i32
  }
}

</mosaic_0001>

<bundles_post_ra>
// kernel: projection_layer.1
= control target key start
LH: loop header
LB: loop body
LE: loop exit
PB: predicated region body
PF: predicated region fallthrough
CT: control target
= control target key end

     0   :  { %8 = vsyncpa [#allocation3], 0  ;;  %s298_s0 = inlined_call_operand.hbm [shape: f32[16,32], index: 0, kind: input, shape index: {}]   ;;  %s299_s1 = inlined_call_operand.hbm [shape: f32[32,64], index: 1, kind: input, shape index: {}]   ;;  %s300_s2 = inlined_call_operand.vmem [shape: f32[1,64], index: 2, kind: input, shape index: {}]   ;;  %s301_s3 = inlined_call_operand.hbm [shape: f32[16,64], index: 3, kind: output, shape index: {}]  }
   0x1   :  { %9 = vsyncpa [#allocation6], 0 }
   0x2   :  { %10 = vsyncpa [#allocation4], 0  ;;  %s250_s12 = smov [#allocation2]  }
   0x3   :  { %s16_s13 = sshll.u32 %s250_s12, 4  ;;  %s17_s13 = int_to_ptr.vmem [resolvable:$true] %s16_s13 }
   0x4   :  { %s192_s14 = scalar_lea.vmem %s17_s13, 256  ;;  %p197_p1 = scmp.lt.s32.totalorder %s17_s13, %s17_s13 }
   0x5   :  { %p193_p0 = scmp.ne.s32.totalorder %s17_s13, %s192_s14  ;;  %p198_p2 = scmp.lt.s32.totalorder %s192_s14, %s192_s14 }
   0x7   :  { %p199_p3 = por %p198_p2, %p197_p1 }
   0x9   :  { %p200_p4 = pnand %p199_p3, %p193_p0 }
   0xb   :  { %203 = shalt.err (!%p200_p4)
}
   0xc   :  { %s251_s15 = smov 128   ;;  %s252_s16 = smov 8  }
   0xd   :  { %22 = dma.hbm_to_vmem [thread:$0]  %s298_s0, 256, %s17_s13, [#allocation3], %s251_s15, %s251_s15, %s252_s16  }
   0xe   :  { %s253_s19 = smov [#allocation5]  }
   0xf   :  { %s28_s20 = sshll.u32 %s253_s19, 4  ;;  %s29_s20 = int_to_ptr.vmem [resolvable:$true] %s28_s20 }
  0x10   :  { %s212_s21 = scalar_lea.vmem %s29_s20, 512  ;;  %p217_p6 = scmp.lt.s32.totalorder %s29_s20, %s29_s20 }
  0x11   :  { %p213_p5 = scmp.ne.s32.totalorder %s29_s20, %s212_s21  ;;  %p218_p7 = scmp.lt.s32.totalorder %s212_s21, %s212_s21 }
  0x13   :  { %p219_p8 = por %p218_p7, %p217_p6 }
  0x15   :  { %p220_p9 = pnand %p219_p8, %p213_p5 }
  0x17   :  { %223 = shalt.err (!%p220_p9)
}
  0x18   :  { %34 = dma.hbm_to_vmem [thread:$0]  %s299_s1, 512, %s29_s20, [#allocation6], %s251_s15, %s251_s15, %s252_s16  }
  0x19   :  { %244 = dma.done.wait [#allocation3], 256  }
  0x1a   :  { %245 = vsyncadd [#allocation3], 4294967040 }
  0x1b   :  { %246 = dma.done.wait [#allocation6], 512  }
  0x1c   :  { %247 = vsyncadd [#allocation6], 4294966784  ;;  %vm56_vm0 = vcmask 261120   ;;  %v48_v0 = vld [vmem:[#allocation5 + $0x18] sm:$0xff]  ;;  %v47_v1 = vld [vmem:[#allocation5 + $0x10] sm:$0xff]  ;;  %vm138_vm1 = vcmask 523264  }
  0x1d   :  { %168 = vmatprep.subr.mxu0 %v48_v0  ;;  %v43_v2 = vld [vmem:[#allocation2] sm:$0xff]  ;;  %v46_v3 = vld [vmem:[#allocation5 + $0x8] sm:$0xff]  ;;  %v45_v4 = vld [vmem:[#allocation5] sm:$0xff]  ;;  %s254_s24 = smov [#allocation7]  }
  0x1e   :  { %169 = vmatpush3.msra.mxu0 %v48_v0  ;;  %176 = vmatprep.mubr.msk.f32.mxu0 %vm56_vm0, %v43_v2  ;;  %v44_v5 = vld [vmem:[#allocation2 + $0x8] sm:$0xff]  ;;  %v159_v6 = vld [vmem:[%s300_s2] ss:$0 sm:$0xff]  ;;  %s146_s25 = sshll.u32 %s254_s24, 4  ;;  %s147_s25 = int_to_ptr.vmem [resolvable:$true] %s146_s25 }
  0x1f   :  { %170 = vmatprep.subr.mxu0 %v47_v1  ;;  %s224_s26 = scalar_lea.vmem %s147_s25, 256  ;;  %p229_p11 = scmp.lt.s32.totalorder %s147_s25, %s147_s25 }
  0x20   :  { %171 = vmatpush3.msra.mxu0 %v47_v1  ;;  %p225_p10 = scmp.ne.s32.totalorder %s147_s25, %s224_s26  ;;  %p230_p12 = scmp.lt.s32.totalorder %s224_s26, %s224_s26 }
  0x21   :  { %172 = vmatprep.subr.mxu0 %v46_v3 }
  0x22   :  { %173 = vmatpush3.msra.mxu0 %v46_v3  ;;  %p231_p13 = por %p230_p12, %p229_p11 }
  0x23   :  { %174 = vmatprep.subr.mxu0 %v45_v4 }
  0x24   :  { %175 = vmatpush3.msra.mxu0 %v45_v4  ;;  %p232_p0 = pnand %p231_p13, %p225_p10 }
  0x25   :  { %177 = vmatmul.mubr.msk.f32.vlgmr.msra.gmra.mxu0 %vm56_vm0, %v44_v5 }
  0xe5   :  { %v178_v7 = vpop.f32.mrf.mxu0 }
  0xe6   :  { %v135_v8 = vadd.f32 %v178_v7, %v159_v6 }
  0xe7   :  { %v129_v9 = vpop.f32.mrf.mxu0 }
  0xe8   :  { %v130_v10 = vadd.f32 %v159_v6, %v129_v9  ;;  %140 = vst.msk [vmem:[#allocation7 + $0x8] sm:$0xff] %vm138_vm1, %v135_v8 }
  0xea   :  { %139 = vst.msk [vmem:[#allocation7] sm:$0xff] %vm138_vm1, %v130_v10 }
  0xeb   :  { %235 = shalt.err (!%p232_p0)
}
  0xec   :  { %152 = dma.vmem_to_hbm [thread:$0]  %s147_s25, 256, %s301_s3, [#allocation4], %s251_s15, %s251_s15, %s252_s16  }
  0xed   :  { %248 = dma.done.wait [#allocation4], 256  }
  0xee   :  { %249 = vsyncadd [#allocation4], 4294967040 }
  0xef   :  { %156 = vsyncpa [#allocation3], 1 }
  0xf0   :  { %157 = vsyncpa [#allocation6], 1 }
  0xf1   :  { %158 = vsyncpa [#allocation4], 1 }

</bundles_post_ra>
